<compile_context>
chip_gen: v5e
topology: v5e:2x2
jax: 0.10.0
libtpu: 0.0.40
codegen_flags: <defaults>
</compile_context>

<pallas_src>
import functools
import math

import jax
import jax.numpy as jnp
import numpy as np
from jax import lax
from jax.experimental import pallas as pl
from jax.experimental.pallas import tpu as pltpu


# ---------------------------------------------------------------------------
# K / V projection kernel: one pass over x2, produces bf16 K and V.
# ---------------------------------------------------------------------------
def kv_projection_kernel(x2_ref, wk_ref, bk_ref, wv_ref, bv_ref, k_ref, v_ref):
    """x2_ref: (1, Tn, D) f32; w*_ref: (D, D) bf16 (in, out); b*_ref: (1, D) f32."""
    x = x2_ref[0].astype(jnp.bfloat16)
    k = jnp.dot(x, wk_ref[...], preferred_element_type=jnp.float32) + bk_ref[...]
    v = jnp.dot(x, wv_ref[...], preferred_element_type=jnp.float32) + bv_ref[...]
    k_ref[0] = k.astype(k_ref.dtype)
    v_ref[0] = v.astype(v_ref.dtype)


def _kv_projection(x2, wk_t, bk, wv_t, bv, *, tn):
    B, N2, D = x2.shape
    grid = (B, N2 // tn)
    const = lambda shape: pl.BlockSpec(shape, lambda b, ni: (0,) * len(shape))
    return pl.pallas_call(
        kv_projection_kernel,
        out_shape=(jax.ShapeDtypeStruct((B, N2, D), jnp.bfloat16),
                   jax.ShapeDtypeStruct((B, N2, D), jnp.bfloat16)),
        grid_spec=pltpu.PrefetchScalarGridSpec(
            num_scalar_prefetch=0,
            grid=grid,
            in_specs=[
                pl.BlockSpec((1, tn, D), lambda b, ni: (b, ni, 0)),  # x2
                const((D, D)), const((1, D)),                        # Wk, bk
                const((D, D)), const((1, D)),                        # Wv, bv
            ],
            out_specs=[
                pl.BlockSpec((1, tn, D), lambda b, ni: (b, ni, 0)),  # K
                pl.BlockSpec((1, tn, D), lambda b, ni: (b, ni, 0)),  # V
            ]),
        compiler_params=pltpu.CompilerParams(
            dimension_semantics=("parallel", "parallel")),
    )(x2, wk_t, bk, wv_t, bv)


# ---------------------------------------------------------------------------
# Flash-style cross-attention kernel over precomputed K / V.
# ---------------------------------------------------------------------------
def cross_attention_kernel(x1_ref, wq_ref, bq_ref, k_ref, v_ref,
                           out_ref,
                           q_scr, m_scr, l_scr, acc_scr,
                           *, scale):
    """One (batch, q-tile, kv-tile) grid step.

    x1_ref : (1, Tq, D) f32   query-side tokens for this (b, qi) tile
    wq_ref : (D, D)    bf16   query weight, (in, out) layout
    bq_ref : (1, D)    f32    query bias
    k_ref  : (1, Tk, D) bf16  precomputed keys for this (b, ki) tile
    v_ref  : (1, Tk, D) bf16  precomputed values for this (b, ki) tile
    out_ref: (1, Tq, D) f32   resident across the kv axis
    """
    kv = pl.program_id(2)

    @pl.when(kv == 0)
    def _init():
        # Project q once per (b, qi) tile; fold 1/sqrt(D) into q before the
        # bf16 cast so the score matmul consumes bf16 operands directly.
        q = jnp.dot(x1_ref[0].astype(jnp.bfloat16), wq_ref[...],
                    preferred_element_type=jnp.float32) + bq_ref[...]
        q_scr[0] = (q * scale).astype(jnp.bfloat16)
        m_scr[...] = jnp.full_like(m_scr, -jnp.inf)
        l_scr[...] = jnp.zeros_like(l_scr)
        acc_scr[...] = jnp.zeros_like(acc_scr)

    # scores[i, j] = <q_i, k_j>  -- contract last dims, no explicit k.T.
    s = lax.dot_general(q_scr[0], k_ref[0],
                        dimension_numbers=(((1,), (1,)), ((), ())),
                        preferred_element_type=jnp.float32)          # (Tq, Tk) f32

    # Online softmax in f32 (VPU/EUP); normalization deferred to the epilogue.
    m_prev = m_scr[0]                                                # (Tq, 1)
    m_new = jnp.maximum(m_prev, jnp.max(s, axis=-1, keepdims=True))
    alpha = jnp.exp(m_prev - m_new)
    p = jnp.exp(s - m_new)                                           # (Tq, Tk) f32
    l_scr[0] = alpha * l_scr[0] + jnp.sum(p, axis=-1, keepdims=True)
    acc_scr[0] = alpha * acc_scr[0] + jnp.dot(
        p.astype(jnp.bfloat16), v_ref[0], preferred_element_type=jnp.float32)
    m_scr[0] = m_new

    @pl.when(kv == pl.num_programs(2) - 1)
    def _finalize():
        # l >= 1 by construction (the row max contributes exp(0) = 1),
        # so the approximate EUP reciprocal is numerically safe.
        inv_l = pl.reciprocal(l_scr[0], approx=True)
        out_ref[0] = (acc_scr[0] * inv_l).astype(out_ref.dtype)


# ---------------------------------------------------------------------------
# Wrapper
# ---------------------------------------------------------------------------
def _pick_tile(n, preferred):
    for t in (preferred, 256, 128):
        if t is not None and 0 < t <= n and n % t == 0:
            return t
    return n  # full extent (always legal; satisfies the (8,128) rule)


def _attn_vmem_bytes(tq, tk, D):
    f32, bf16 = 4, 2
    return (2 * tq * D * f32          # x1 tile (double-buffered)
            + 2 * D * D * bf16        # Wq (double-buffered)
            + 2 * D * f32             # bq
            + 2 * 2 * tk * D * bf16   # K, V tiles (double-buffered)
            + 2 * tq * D * f32        # out tile (double-buffered)
            + tq * D * bf16           # q scratch
            + 2 * tq * f32            # m, l scratch
            + tq * D * f32)           # acc scratch


def cross_attention_pallas(x1, x2, params, *, tq=None, tk=None, tn=None):
    """x1: (B, N1, D), x2: (B, N2, D) float32.  Returns (B, N1, D).

    params = (wq, bq, wk, bk, wv, bv) in PyTorch nn.Linear layout:
      weights (out, in), biases (out,).
    """
    wq, bq, wk, bk, wv, bv = params
    B, N1, D = x1.shape
    B2, N2, D2 = x2.shape
    assert B == B2 and D == D2
    assert wq.shape == (D, D) and bq.shape == (D,)

    tq = _pick_tile(N1, tq)
    tk = _pick_tile(N2, tk)
    tn = _pick_tile(N2, tn)
    assert N1 % tq == 0 and N2 % tk == 0 and N2 % tn == 0
    assert tq == N1 or tq % 8 == 0
    assert tk == N2 or tk % 8 == 0

    # Transpose to (in, out) once, cast weights (MXU operands) to bf16,
    # keep biases in f32 (they are added on the VPU).
    to_w = lambda w: jnp.asarray(w.T, jnp.bfloat16)
    to_b = lambda b: jnp.asarray(b, jnp.float32).reshape(1, D)
    wq_t, wk_t, wv_t = to_w(wq), to_w(wk), to_w(wv)
    bq_r, bk_r, bv_r = to_b(bq), to_b(bk), to_b(bv)

    # K / V computed exactly once (per batch, per kv position).
    k, v = _kv_projection(x2, wk_t, bk_r, wv_t, bv_r, tn=tn)

    scale = 1.0 / math.sqrt(D)
    kernel = functools.partial(cross_attention_kernel, scale=scale)
    grid = (B, N1 // tq, N2 // tk)

    vmem_limit = int(min(48 * 2**20, max(32 * 2**20, 2 * _attn_vmem_bytes(tq, tk, D))))

    return pl.pallas_call(
        kernel,
        out_shape=jax.ShapeDtypeStruct((B, N1, D), x1.dtype),
        grid_spec=pltpu.PrefetchScalarGridSpec(
            num_scalar_prefetch=0,
            grid=grid,
            in_specs=[
                pl.BlockSpec((1, tq, D), lambda b, qi, ki: (b, qi, 0)),  # x1
                pl.BlockSpec((D, D), lambda b, qi, ki: (0, 0)),          # Wq
                pl.BlockSpec((1, D), lambda b, qi, ki: (0, 0)),          # bq
                pl.BlockSpec((1, tk, D), lambda b, qi, ki: (b, ki, 0)),  # K
                pl.BlockSpec((1, tk, D), lambda b, qi, ki: (b, ki, 0)),  # V
            ],
            out_specs=pl.BlockSpec((1, tq, D), lambda b, qi, ki: (b, qi, 0)),
            scratch_shapes=[
                pltpu.VMEM((1, tq, D), jnp.bfloat16),  # scaled q tile (MXU operand)
                pltpu.VMEM((1, tq, 1), jnp.float32),   # running row-max
                pltpu.VMEM((1, tq, 1), jnp.float32),   # running row-sum
                pltpu.VMEM((1, tq, D), jnp.float32),   # unnormalized output
            ]),
        compiler_params=pltpu.CompilerParams(
            dimension_semantics=("parallel", "parallel", "arbitrary"),
            vmem_limit_bytes=vmem_limit),
    )(x1, wq_t, bq_r, k, v)


# ---------------------------------------------------------------------------
# Pure-JAX reference mirroring the PyTorch forward exactly (f32).
# ---------------------------------------------------------------------------
def cross_attention_reference(x1, x2, params):
    wq, bq, wk, bk, wv, bv = params     # PyTorch layout: (out, in) / (out,)
    D = x1.shape[-1]
    q = x1 @ wq.T + bq
    k = x2 @ wk.T + bk
    v = x2 @ wv.T + bv
    scores = jnp.einsum('bqd,bkd->bqk', q, k) / math.sqrt(D)
    attn = jax.nn.softmax(scores, axis=-1)
    return jnp.einsum('bqk,bkd->bqd', attn, v)


if __name__ == "__main__":
    # Small shapes consistent with the module (nn.Linear(dim, dim) heads);
    # D = 128 keeps score and output tiles lane-dense.
    B, N1, N2, D = 2, 256, 256, 128

    key = jax.random.PRNGKey(0)
    ks = jax.random.split(key, 8)
    bound = 1.0 / math.sqrt(D)   # PyTorch nn.Linear default init range

    # PyTorch nn.Linear layout: weight (out, in), bias (out,).
    wq = jax.random.uniform(ks[0], (D, D), jnp.float32, -bound, bound)
    bq = jax.random.uniform(ks[1], (D,), jnp.float32, -bound, bound)
    wk = jax.random.uniform(ks[2], (D, D), jnp.float32, -bound, bound)
    bk = jax.random.uniform(ks[3], (D,), jnp.float32, -bound, bound)
    wv = jax.random.uniform(ks[4], (D, D), jnp.float32, -bound, bound)
    bv = jax.random.uniform(ks[5], (D,), jnp.float32, -bound, bound)
    params = (wq, bq, wk, bk, wv, bv)

    x1 = jax.random.normal(ks[6], (B, N1, D), jnp.float32)
    x2 = jax.random.normal(ks[7], (B, N2, D), jnp.float32)

    # tq = tk = 128 -> grid (2, 2, 2): exercises multi q-tile and the
    # multi-kv-tile online-softmax path with fully lane-dense tiles.
    out = cross_attention_pallas(x1, x2, params, tq=128, tk=128)
    out = jax.block_until_ready(out)

    ref = cross_attention_reference(x1, x2, params)
    # bf16 MXU operands with f32 accumulation -> compare at bf16-level tolerance.
    np.testing.assert_allclose(np.asarray(out), np.asarray(ref),
                               rtol=2e-2, atol=2e-2)

    print("KERNEL_OK")
</pallas_src>

<mosaic_0001>
module attributes {stable_mosaic.version = 11 : i64} {
  func.func @kv_projection_kernel(%arg0: i32, %arg1: i32, %arg2: memref<1x256x128xf32, #tpu.memory_space<vmem>>, %arg3: memref<128x128xbf16, #tpu.memory_space<vmem>>, %arg4: memref<1x128xf32, #tpu.memory_space<vmem>>, %arg5: memref<128x128xbf16, #tpu.memory_space<vmem>>, %arg6: memref<1x128xf32, #tpu.memory_space<vmem>>, %arg7: memref<1x256x128xbf16, #tpu.memory_space<vmem>>, %arg8: memref<1x256x128xbf16, #tpu.memory_space<vmem>>) attributes {dimension_semantics = [#tpu.dimension_semantics<parallel>, #tpu.dimension_semantics<parallel>], iteration_bounds = array<i64: 2, 1>, scalar_prefetch = 0 : i64, scratch_operands = 0 : i64, tpu.core_type = #tpu.core_type<tc>, window_params = [{transform_indices = @transform_0, window_bounds = array<i64: 1, 256, 128>}, {pipeline_mode = #tpu.pipeline_mode<synchronous>, transform_indices = @transform_1, window_bounds = array<i64: 128, 128>}, {pipeline_mode = #tpu.pipeline_mode<synchronous>, transform_indices = @transform_2, window_bounds = array<i64: 1, 128>}, {pipeline_mode = #tpu.pipeline_mode<synchronous>, transform_indices = @transform_3, window_bounds = array<i64: 128, 128>}, {pipeline_mode = #tpu.pipeline_mode<synchronous>, transform_indices = @transform_4, window_bounds = array<i64: 1, 128>}, {transform_indices = @transform_5, window_bounds = array<i64: 1, 256, 128>}, {transform_indices = @transform_6, window_bounds = array<i64: 1, 256, 128>}]} {
    %c0 = arith.constant 0 : index
    %c0_0 = arith.constant 0 : index
    %c0_1 = arith.constant 0 : index
    %0 = vector.load %arg2[%c0, %c0_0, %c0_1] : memref<1x256x128xf32, #tpu.memory_space<vmem>>, vector<1x256x128xf32>
    %1 = vector.shape_cast %0 : vector<1x256x128xf32> to vector<256x128xf32>
    %2 = arith.truncf %1 : vector<256x128xf32> to vector<256x128xbf16>
    %c0_2 = arith.constant 0 : index
    %c0_3 = arith.constant 0 : index
    %3 = vector.load %arg3[%c0_2, %c0_3] : memref<128x128xbf16, #tpu.memory_space<vmem>>, vector<128x128xbf16>
    %cst = arith.constant dense<0.000000e+00> : vector<256x128xf32>
    %4 = tpu.matmul %2, %3, %cst {dimension_numbers = #tpu.dot_dimension_numbers<[1], [0], [0], [1], [0, 0, 1, 1], [], []>} : vector<256x128xbf16>, vector<128x128xbf16>, vector<256x128xf32> -> vector<256x128xf32>
    %c0_4 = arith.constant 0 : index
    %c0_5 = arith.constant 0 : index
    %5 = vector.load %arg4[%c0_4, %c0_5] : memref<1x128xf32, #tpu.memory_space<vmem>>, vector<1x128xf32>
    %6 = vector.broadcast %5 : vector<1x128xf32> to vector<256x128xf32>
    %7 = arith.addf %4, %6 : vector<256x128xf32>
    %c0_6 = arith.constant 0 : index
    %c0_7 = arith.constant 0 : index
    %8 = vector.load %arg5[%c0_6, %c0_7] : memref<128x128xbf16, #tpu.memory_space<vmem>>, vector<128x128xbf16>
    %cst_8 = arith.constant dense<0.000000e+00> : vector<256x128xf32>
    %9 = tpu.matmul %2, %8, %cst_8 {dimension_numbers = #tpu.dot_dimension_numbers<[1], [0], [0], [1], [0, 0, 1, 1], [], []>} : vector<256x128xbf16>, vector<128x128xbf16>, vector<256x128xf32> -> vector<256x128xf32>
    %c0_9 = arith.constant 0 : index
    %c0_10 = arith.constant 0 : index
    %10 = vector.load %arg6[%c0_9, %c0_10] : memref<1x128xf32, #tpu.memory_space<vmem>>, vector<1x128xf32>
    %11 = vector.broadcast %10 : vector<1x128xf32> to vector<256x128xf32>
    %12 = arith.addf %9, %11 : vector<256x128xf32>
    %13 = arith.truncf %7 : vector<256x128xf32> to vector<256x128xbf16>
    %c0_11 = arith.constant 0 : index
    %c0_12 = arith.constant 0 : index
    %c0_13 = arith.constant 0 : index
    %14 = vector.load %arg7[%c0_11, %c0_12, %c0_13] : memref<1x256x128xbf16, #tpu.memory_space<vmem>>, vector<1x256x128xbf16>
    %15 = vector.shape_cast %14 : vector<1x256x128xbf16> to vector<256x128xbf16>
    %16 = vector.shape_cast %13 : vector<256x128xbf16> to vector<1x256x128xbf16>
    tpu.vector_store %arg7[%c0_11, %c0_12, %c0_13], %16 {strides = array<i32>} : memref<1x256x128xbf16, #tpu.memory_space<vmem>>, vector<1x256x128xbf16>,
    %17 = arith.truncf %12 : vector<256x128xf32> to vector<256x128xbf16>
    %c0_14 = arith.constant 0 : index
    %c0_15 = arith.constant 0 : index
    %c0_16 = arith.constant 0 : index
    %18 = vector.load %arg8[%c0_14, %c0_15, %c0_16] : memref<1x256x128xbf16, #tpu.memory_space<vmem>>, vector<1x256x128xbf16>
    %19 = vector.shape_cast %18 : vector<1x256x128xbf16> to vector<256x128xbf16>
    %20 = vector.shape_cast %17 : vector<256x128xbf16> to vector<1x256x128xbf16>
    tpu.vector_store %arg8[%c0_14, %c0_15, %c0_16], %20 {strides = array<i32>} : memref<1x256x128xbf16, #tpu.memory_space<vmem>>, vector<1x256x128xbf16>,
    return
  }
  func.func @transform_0(%arg0: i32, %arg1: i32) -> (i32, i32, i32) {
    %c0_i32 = arith.constant 0 : i32
    %c0_i32_0 = arith.constant 0 : i32
    return %arg0, %arg1, %c0_i32 : i32, i32, i32
  }
  func.func @transform_1(%arg0: i32, %arg1: i32) -> (i32, i32) {
    %c0_i32 = arith.constant 0 : i32
    %c0_i32_0 = arith.constant 0 : i32
    %c0_i32_1 = arith.constant 0 : i32
    return %c0_i32, %c0_i32_0 : i32, i32
  }
  func.func @transform_2(%arg0: i32, %arg1: i32) -> (i32, i32) {
    %c0_i32 = arith.constant 0 : i32
    %c0_i32_0 = arith.constant 0 : i32
    %c0_i32_1 = arith.constant 0 : i32
    return %c0_i32, %c0_i32_0 : i32, i32
  }
  func.func @transform_3(%arg0: i32, %arg1: i32) -> (i32, i32) {
    %c0_i32 = arith.constant 0 : i32
    %c0_i32_0 = arith.constant 0 : i32
    %c0_i32_1 = arith.constant 0 : i32
    return %c0_i32, %c0_i32_0 : i32, i32
  }
  func.func @transform_4(%arg0: i32, %arg1: i32) -> (i32, i32) {
    %c0_i32 = arith.constant 0 : i32
    %c0_i32_0 = arith.constant 0 : i32
    %c0_i32_1 = arith.constant 0 : i32
    return %c0_i32, %c0_i32_0 : i32, i32
  }
  func.func @transform_5(%arg0: i32, %arg1: i32) -> (i32, i32, i32) {
    %c0_i32 = arith.constant 0 : i32
    %c0_i32_0 = arith.constant 0 : i32
    return %arg0, %arg1, %c0_i32 : i32, i32, i32
  }
  func.func @transform_6(%arg0: i32, %arg1: i32) -> (i32, i32, i32) {
    %c0_i32 = arith.constant 0 : i32
    %c0_i32_0 = arith.constant 0 : i32
    return %arg0, %arg1, %c0_i32 : i32, i32, i32
  }
}

</mosaic_0001>

<bundles_post_ra>
// kernel: tpu_custom_call.1
= control target key start
LH: loop header
LB: loop body
LE: loop exit
PB: predicated region body
PF: predicated region fallthrough
CT: control target
= control target key end

     0   :  { %s1999_s0 = inlined_call_operand.hbm [shape: f32[2,256,128], index: 0, kind: input, shape index: {}]   ;;  %s2000_s1 = inlined_call_operand.hbm [shape: bf16[128,128], index: 1, kind: input, shape index: {}]   ;;  %s2001_s2 = inlined_call_operand.vmem [shape: f32[1,128], index: 2, kind: input, shape index: {}]   ;;  %s2002_s3 = inlined_call_operand.hbm [shape: bf16[128,128], index: 3, kind: input, shape index: {}]   ;;  %s2003_s4 = inlined_call_operand.vmem [shape: f32[1,128], index: 4, kind: input, shape index: {}]   ;;  %s2004_s5 = inlined_call_operand.hbm [shape: bf16[2,256,128], index: 5, kind: output, shape index: {0}]   ;;  %s2005_s6 = inlined_call_operand.hbm [shape: bf16[2,256,128], index: 6, kind: output, shape index: {1}]  }
   0x1   :  { %2008 = sst [smem:[#allocation17_spill]] %s2000_s1 }
   0x2   :  { %2009 = sst [smem:[#allocation18_spill]] %s2002_s3 }
   0x3   :  { %12 = vsyncpa [#allocation3], 0 }
   0x4   :  { %14 = vsyncpa [#allocation3 + $0x1], 0 }
   0x5   :  { %15 = vsyncpa [#allocation6], 0 }
   0x6   :  { %16 = vsyncpa [#allocation4], 0 }
   0x7   :  { %18 = vsyncpa [#allocation4 + $0x1], 0 }
   0x8   :  { %19 = vsyncpa [#allocation10], 0 }
   0x9   :  { %21 = vsyncpa [#allocation10 + $0x1], 0  ;;  %s1674_s21 = smov 0   ;;  %s1676_s22 = smov 0  }
   0xa   :  { %s1678_s23 = smov 0   ;;  %s1680_s24 = smov 0  }
   0xb   :  { %s1682_s25 = smov 0   ;;  %s1684_s26 = smov 0  }
   0xc LB: > { %s1013_s27 = sadd.s32 4294967295, %s1629_s26   ;;  %s1014_s28 = sadd.s32 4294967294, %s1629_s26   ;;  %s1629_s26 = sphi %s1684_s26, %s27_s26   ;;  %s1625_s25 = sphi %s1682_s25, %s2027_s25   ;;  %s1621_s24 = sphi %s1680_s24, %s2026_s24   ;;  %s1617_s23 = sphi %s1678_s23, %s2025_s23   ;;  %s1613_s22 = sphi %s1676_s22, %s2024_s22   ;;  %s1609_s21 = sphi %s1674_s21, %s2023_s21  }
   0xd   : > { %p61_p0 = scmp.ne.s32.totalorder %s1613_s22, %s1609_s21  ;;  %p1708_p1 = scmp.eq.s32.totalorder %s1013_s27, 0 }
   0xe   : > { %p1712_p2 = scmp.eq.s32.totalorder %s1013_s27, 1  ;;  %p177_p3 = scmp.eq.s32.totalorder %s1014_s28, 1 }
   0xf   : > { %p1718_p4 = por %p1708_p1, %p61_p0  ;;  %p1015_p5 = scmp.ge.s32.totalorder %s1629_s26, 1 }
  0x10   : > { %p1723_p6 = por %p177_p3, %p61_p0  ;;  %p212_p7 = scmp.lt.s32.totalorder %s1629_s26, 3 }
  0x11   : > { %s2015_s1 = sld [smem:[#allocation17_spill]]  ;;  %s1631_s13 = smov [#allocation5]  }
  0x12   : > { %s2013_s8 = scalar_select %p1723_p6, 1, 0 }
  0x13   : > { %p1731_p8 = pnand %p1015_p5, %p212_p7  ;;  %s225_s14 = sshll.u32 %s1631_s13, 4  ;;  %s226_s14 = int_to_ptr.vmem [resolvable:$true] %s225_s14 }
  0x14   : > { %2014 = sst [smem:[#allocation15_spill]] %s2013_s8  ;;  %p1018_p11 = scmp.ge.s32.totalorder %s1629_s26, 2 }
  0x15   : > { %p1339_p9 = pneg %p1731_p8  ;;  %s2017_s3 = sld [smem:[#allocation18_spill]] }
  0x16   : > { %s1632_s18 = smov 64   ;;  %s1633_s19 = smov 4  }
  0x17   : > { %s223_s11 = sshll.u32 %s2015_s1, 4  ;;  %p1340_p10 = pnand %p1339_p9, %p1708_p1  ;;  %s224_s11 = int_to_ptr.hbm [resolvable:$true] %s223_s11 }
  0x18   : > { %s1634_s20 = smov [#allocation7]   ;;  %s39_s28 = sadd.s32 1, %s1625_s25 }
  0x19   : > { %1342 = dma.hbm_to_vmem [thread:$0]  (!%p1340_p10), %s224_s11, 1024, %s226_s14, [#allocation6], %s1632_s18, %s1632_s18, %s1633_s19  }
  0x1a   : > { %s242_s27 = sshll.u32 %s1634_s20, 4  ;;  %s48_s9 = sadd.s32 1, %s1617_s23  ;;  %s243_s27 = int_to_ptr.vmem [resolvable:$true] %s242_s27 }
  0x1b   : > { %s240_s17 = sshll.u32 %s2017_s3, 4  ;;  %p41_p12 = scmp.ge.s32.totalorder %s39_s28, 2  ;;  %s241_s17 = int_to_ptr.hbm [resolvable:$true] %s240_s17 }
  0x1c   : > { %1345 = dma.hbm_to_vmem [thread:$0]  (!%p1340_p10), %s241_s17, 1024, %s243_s27, [#allocation6], %s1632_s18, %s1632_s18, %s1633_s19  }
  0x1d   : > { %p55_p13 = scmp.ne.s32.totalorder %s1617_s23, %s1613_s22  ;;  %p56_p0 = scmp.eq.s32.totalorder %s1629_s26, 0 }
  0x1e   : > { %p1359_p3 = scmp.lt.s32.totalorder %s1629_s26, 2  ;;  %s2029_s28 = smov (%p41_p12, %s39_s28), 0 }
  0x1f   : > { %2018 = sst [smem:[#allocation16_spill]] %s2029_s28  ;;  %p1751_p5 = por %p56_p0, %p55_p13 }
  0x20   : > { %p1757_p7 = por %p1712_p2, %p55_p13  ;;  %s43_s13 = ssub.s32 %s1625_s25, %s2029_s28 }
  0x21   : > { %s259_s14 = sand.u32 1, %s1617_s23   ;;  %p46_p9 = scmp.eq.s32.totalorder %s43_s13, 0 }
  0x22   : > { %s1019_s15 = sshll.u32 %s259_s14, 8  ;;  %s1100_s16 = sshll.u32 %s1625_s25, 8 }
  0x23   : > { %s1766_s17 = scalar_select %p46_p9, %s1617_s23, %s48_s9  }
  0x24   : > { %s270_s20 = scalar_lea.hbm %s1999_s0, %s1100_s16  ;;  %s263_s1 = scalar_lea.vmem [#allocation2], %s1019_s15 }
  0x25   : > { %s271_s27 = sshll.u32 %s270_s20, 4  ;;  %s273_s3 = sshll.u32 %s263_s1, 4  ;;  %s272_s27 = int_to_ptr.hbm [resolvable:$true] %s271_s27  ;;  %s274_s3 = int_to_ptr.vmem [resolvable:$true] %s273_s3 }
  0x26   : > { %p1347_p2 = pnand %p1359_p3, %p1751_p5  ;;  %s260_s30 = scalar_lea.sflag [#allocation3], %s259_s14 }
  0x27   : > { %s1635_s28 = smov 128   ;;  %s1636_s8 = smov 8  }
  0x28   : > { %1349 = dma.hbm_to_vmem [thread:$0]  (!%p1347_p2), %s272_s27, 4096, %s274_s3, %s260_s30, %s1635_s28, %s1635_s28, %s1636_s8  }
  0x29   : > { %285 = sbr.rel (%p1731_p8) target bundleno = 354 (0x162), region = 40  ;;  %s1778_s9 = sand.u32 (!%p1731_p8), 1, %s1613_s22  }
  0x2a   : > { %s1023_s13 = sshll.u32 (!%p1731_p8), %s1778_s9, 8  ;;  %s288_s1 = scalar_lea.sflag (!%p1731_p8), [#allocation3], %s1778_s9 }
  0x2b   : > { %s1782_s15 = scalar_lea.vmem (!%p1731_p8), [#allocation2], %s1023_s13 }
  0x2e   : > { %1592 = dma.done.wait (%p1718_p4), %s288_s1, 4096  }
  0x2f   : > { %1594 = vsyncadd (%p1718_p4), %s288_s1, 4294963200 }
  0x30   : > { %1596 = dma.done.wait (%p1708_p1), [#allocation6], 2048  }
  0x31   : > { %1598 = vsyncadd (%p1708_p1), [#allocation6], 4294965248  ;;  %v1108_v0 = vld [vmem:[#allocation5 + $0x38] sm:$0xff]  ;;  %v1107_v2 = vld [vmem:[#allocation5 + $0x30] sm:$0xff]  ;;  %s1026_s12 = sshll.u32 %s1778_s9, 7  ;;  %s1117_s14 = sshll.u32 %s1621_s24, 7 }
  0x32   : > { %v1116_v1 = vld [vmem:[#allocation7 + $0x38] sm:$0xff]  ;;  %455 = vmatpush.bf16.msra.mxu0 %v1108_v0  ;;  %1309 = vmatpush.bf16.msra.mxu2 %v1108_v0  ;;  %v1115_v3 = vld [vmem:[#allocation7 + $0x30] sm:$0xff]  ;;  %v1106_v4 = vld [vmem:[#allocation5 + $0x28] sm:$0xff]  ;;  %s1839_s28 = scalar_lea.vmem [#allocation8], %s1026_s12  ;;  %s1842_s10 = scalar_lea.vmem [#allocation9], %s1026_s12 }
  0x33   : > { %612 = vmatpush.bf16.msra.mxu1 %v1116_v1  ;;  %1317 = vmatpush.bf16.msra.mxu3 %v1116_v1  ;;  %v1114_v5 = vld [vmem:[#allocation7 + $0x28] sm:$0xff]  ;;  %v1105_v6 = vld [vmem:[#allocation5 + $0x20] sm:$0xff]  ;;  %v1104_v8 = vld [vmem:[#allocation5 + $0x18] sm:$0xff]  ;;  %s848_s19 = scalar_lea.hbm %s2004_s5, %s1117_s14  ;;  %s849_s20 = sshll.u32 %s1839_s28, 4  ;;  %s1939_s20 = int_to_ptr.vmem [resolvable:$true] %s849_s20 }
  0x34   : > { %v1113_v7 = vld [vmem:[#allocation7 + $0x20] sm:$0xff]  ;;  %v1112_v9 = vld [vmem:[#allocation7 + $0x18] sm:$0xff]  ;;  %v1103_v10 = vld [vmem:[#allocation5 + $0x10] sm:$0xff]  ;;  %s867_s30 = scalar_lea.hbm %s2005_s6, %s1117_s14  ;;  %s851_s13 = sshll.u32 %s848_s19, 4  ;;  %s852_s13 = int_to_ptr.hbm [resolvable:$true] %s851_s13 }
  0x35   : > { %v1111_v11 = vld [vmem:[#allocation7 + $0x10] sm:$0xff]  ;;  %v1102_v12 = vld [vmem:[#allocation5 + $0x8] sm:$0xff]  ;;  %v1101_v14 = vld [vmem:[#allocation5] sm:$0xff]  ;;  %s868_s1 = sshll.u32 %s1842_s10, 4  ;;  %s830_s3 = scalar_lea.sflag [#allocation4], %s1778_s9  ;;  %s1945_s1 = int_to_ptr.vmem [resolvable:$true] %s868_s1 }
  0x36   : > { %456 = vmatpush.bf16.msra.mxu0 %v1107_v2  ;;  %1310 = vmatpush.bf16.msra.mxu2 %v1107_v2  ;;  %v1110_v13 = vld [vmem:[#allocation7 + $0x8] sm:$0xff]  ;;  %v339_v15 = vld [vmem:[%s1782_s15] sm:$0xff]  ;;  %v341_v22 = vld [vmem:[%s1782_s15 + $0x10] sm:$0xff]  ;;  %s1525_s29 = sshra.s32 %s852_s13, 4  ;;  %s1531_s14 = scalar_lea.hbm %s2004_s5, 256  ;;  %s1526_s29 = int_to_ptr.hbm [resolvable:$true] %s1525_s29 }
  0x37   : > { %613 = vmatpush.bf16.msra.mxu1 %v1115_v3  ;;  %1318 = vmatpush.bf16.msra.mxu3 %v1115_v3  ;;  %v340_v16 = vld [vmem:[%s1782_s15 + $0x8] sm:$0xff]  ;;  %v355_v17 = vld [vmem:[%s1782_s15 + $0x80] sm:$0xff]  ;;  %v342_v23 = vld [vmem:[%s1782_s15 + $0x18] sm:$0xff]  ;;  %s1527_s7 = scalar_lea.hbm %s1526_s29, 128  ;;  %p1532_p10 = scmp.lt.s32.totalorder %s1526_s29, %s2004_s5 }
  0x38   : > { %v356_v18 = vld [vmem:[%s1782_s15 + $0x88] sm:$0xff]  ;;  %v1109_v19 = vld [vmem:[#allocation7] sm:$0xff]  ;;  %v371_v20 = vpack.c.bf16 %v340_v16, %v339_v15  ;;  %v357_v24 = vld [vmem:[%s1782_s15 + $0x90] sm:$0xff]  ;;  %v372_v26 = vpack.c.bf16 %v342_v23, %v341_v22  ;;  %p1528_p1 = scmp.ne.s32.totalorder %s1526_s29, %s1527_s7  ;;  %p1533_p12 = scmp.lt.s32.totalorder %s1531_s14, %s1527_s7 }
  0x39   : > { %v379_v21 = vpack.c.bf16 %v356_v18, %v355_v17  ;;  %v358_v25 = vld [vmem:[%s1782_s15 + $0x98] sm:$0xff]  ;;  %v343_v28 = vld [vmem:[%s1782_s15 + $0x20] sm:$0xff]  ;;  %v344_v29 = vld [vmem:[%s1782_s15 + $0x28] sm:$0xff] }
  0x3a   : > { %457 = vmatpush.bf16.msra.mxu0 %v1106_v4  ;;  %1311 = vmatpush.bf16.msra.mxu2 %v1106_v4  ;;  %v380_v27 = vpack.c.bf16 %v358_v25, %v357_v24  ;;  %v359_v30 = vld [vmem:[%s1782_s15 + $0xa0] sm:$0xff]  ;;  %v360_v31 = vld [vmem:[%s1782_s15 + $0xa8] sm:$0xff]  ;;  %v373_v32 = vpack.c.bf16 %v344_v29, %v343_v28  ;;  %v345_v34 = vld [vmem:[%s1782_s15 + $0x30] sm:$0xff]  ;;  %p1529_p4 = pnand %p1528_p1, %p1757_p7  ;;  %p1534_p13 = por %p1533_p12, %p1532_p10 }
  0x3b   : > { %614 = vmatpush.bf16.msra.mxu1 %v1114_v5  ;;  %1319 = vmatpush.bf16.msra.mxu3 %v1114_v5  ;;  %v381_v33 = vpack.c.bf16 %v360_v31, %v359_v30  ;;  %v346_v35 = vld [vmem:[%s1782_s15 + $0x38] sm:$0xff]  ;;  %v361_v36 = vld [vmem:[%s1782_s15 + $0xb0] sm:$0xff]  ;;  %v347_v40 = vld [vmem:[%s1782_s15 + $0x40] sm:$0xff] }
  0x3c   : > { %v362_v37 = vld [vmem:[%s1782_s15 + $0xb8] sm:$0xff]  ;;  %v374_v38 = vpack.c.bf16 %v346_v35, %v345_v34  ;;  %v348_v41 = vld [vmem:[%s1782_s15 + $0x48] sm:$0xff]  ;;  %v363_v42 = vld [vmem:[%s1782_s15 + $0xc0] sm:$0xff]  ;;  %p1530_p8 = pneg %p1529_p4 }
  0x3d   : > { %v382_v39 = vpack.c.bf16 %v362_v37, %v361_v36  ;;  %v364_v43 = vld [vmem:[%s1782_s15 + $0xc8] sm:$0xff]  ;;  %v375_v44 = vpack.c.bf16 %v348_v41, %v347_v40  ;;  %v349_v46 = vld [vmem:[%s1782_s15 + $0x50] sm:$0xff]  ;;  %v350_v47 = vld [vmem:[%s1782_s15 + $0x58] sm:$0xff] }
  0x3e   : > { %458 = vmatpush.bf16.msra.mxu0 %v1105_v6  ;;  %1312 = vmatpush.bf16.msra.mxu2 %v1105_v6  ;;  %v383_v45 = vpack.c.bf16 %v364_v43, %v363_v42  ;;  %v365_v48 = vld [vmem:[%s1782_s15 + $0xd0] sm:$0xff]  ;;  %v366_v49 = vld [vmem:[%s1782_s15 + $0xd8] sm:$0xff]  ;;  %v376_v50 = vpack.c.bf16 %v350_v47, %v349_v46  ;;  %v351_v52 = vld [vmem:[%s1782_s15 + $0x60] sm:$0xff]  ;;  %p1535_p0 = pnand %p1534_p13, %p1530_p8 }
  0x3f   : > { %615 = vmatpush.bf16.msra.mxu1 %v1113_v7  ;;  %1320 = vmatpush.bf16.msra.mxu3 %v1113_v7  ;;  %v384_v51 = vpack.c.bf16 %v366_v49, %v365_v48  ;;  %v352_v53 = vld [vmem:[%s1782_s15 + $0x68] sm:$0xff]  ;;  %v367_v54 = vld [vmem:[%s1782_s15 + $0xe0] sm:$0xff]  ;;  %v353_v58 = vld [vmem:[%s1782_s15 + $0x70] sm:$0xff] }
  0x40   : > { %v368_v55 = vld [vmem:[%s1782_s15 + $0xe8] sm:$0xff]  ;;  %v377_v56 = vpack.c.bf16 %v352_v53, %v351_v52  ;;  %v354_v59 = vld [vmem:[%s1782_s15 + $0x78] sm:$0xff]  ;;  %v369_v60 = vld [vmem:[%s1782_s15 + $0xf0] sm:$0xff] }
  0x41   : > { %v385_v57 = vpack.c.bf16 %v368_v55, %v367_v54  ;;  %v370_v61 = vld [vmem:[%s1782_s15 + $0xf8] sm:$0xff]  ;;  %v378_v62 = vpack.c.bf16 %v354_v59, %v353_v58  ;;  %v1827_v2 = vld [vmem:[%s2001_s2] ss:$0 sm:$0xff]  ;;  %s870_s15 = sshll.u32 %s867_s30, 4  ;;  %s1947_s15 = int_to_ptr.hbm [resolvable:$true] %s870_s15 }
  0x42   : > { %459 = vmatpush.bf16.msra.mxu0 %v1104_v8  ;;  %1313 = vmatpush.bf16.msra.mxu2 %v1104_v8  ;;  %v386_v63 = vpack.c.bf16 %v370_v61, %v369_v60  ;;  %v1832_v3 = vld [vmem:[%s2003_s4] ss:$0 sm:$0xff] }
  0x43   : > { %616 = vmatpush.bf16.msra.mxu1 %v1112_v9  ;;  %1321 = vmatpush.bf16.msra.mxu3 %v1112_v9 }
  0x46   : > { %460 = vmatpush.bf16.msra.mxu0 %v1103_v10  ;;  %1314 = vmatpush.bf16.msra.mxu2 %v1103_v10 }
  0x47   : > { %617 = vmatpush.bf16.msra.mxu1 %v1111_v11  ;;  %1322 = vmatpush.bf16.msra.mxu3 %v1111_v11 }
  0x4a   : > { %461 = vmatpush.bf16.msra.mxu0 %v1102_v12  ;;  %1315 = vmatpush.bf16.msra.mxu2 %v1102_v12 }
  0x4b   : > { %618 = vmatpush.bf16.msra.mxu1 %v1110_v13  ;;  %1323 = vmatpush.bf16.msra.mxu3 %v1110_v13 }
  0x4e   : > { %462 = vmatpush.bf16.msra.mxu0 %v1101_v14  ;;  %1316 = vmatpush.bf16.msra.mxu2 %v1101_v14 }
  0x4f   : > { %619 = vmatpush.bf16.msra.mxu1 %v1109_v19  ;;  %1324 = vmatpush.bf16.msra.mxu3 %v1109_v19 }
  0x51   : > { %463 = vmatmul.bf16.vlgmr.msra.gmra.mxu0 %v371_v20  ;;  %503 = vmatmul.bf16.vlgmr.msra.gmra.mxu2 %v379_v21 }
  0x52   : > { %620 = vmatmul.bf16.vlgmr.msra.gmra.mxu1 %v371_v20  ;;  %660 = vmatmul.bf16.vlgmr.msra.gmra.mxu3 %v379_v21 }
  0x61   : > { %468 = vmatmul.bf16.gmra.mxu0 %v372_v26  ;;  %508 = vmatmul.bf16.gmra.mxu2 %v380_v27 }
  0x62   : > { %625 = vmatmul.bf16.gmra.mxu1 %v372_v26  ;;  %665 = vmatmul.bf16.gmra.mxu3 %v380_v27 }
  0x71   : > { %473 = vmatmul.bf16.gmra.mxu0 %v373_v32  ;;  %513 = vmatmul.bf16.gmra.mxu2 %v381_v33 }
  0x72   : > { %630 = vmatmul.bf16.gmra.mxu1 %v373_v32  ;;  %670 = vmatmul.bf16.gmra.mxu3 %v381_v33 }
  0x81   : > { %478 = vmatmul.bf16.gmra.mxu0 %v374_v38  ;;  %518 = vmatmul.bf16.gmra.mxu2 %v382_v39 }
  0x82   : > { %635 = vmatmul.bf16.gmra.mxu1 %v374_v38  ;;  %675 = vmatmul.bf16.gmra.mxu3 %v382_v39 }
  0x91   : > { %483 = vmatmul.bf16.gmra.mxu0 %v375_v44  ;;  %523 = vmatmul.bf16.gmra.mxu2 %v383_v45 }
  0x92   : > { %640 = vmatmul.bf16.gmra.mxu1 %v375_v44  ;;  %680 = vmatmul.bf16.gmra.mxu3 %v383_v45 }
  0xa1   : > { %488 = vmatmul.bf16.gmra.mxu0 %v376_v50  ;;  %528 = vmatmul.bf16.gmra.mxu2 %v384_v51 }
  0xa2   : > { %645 = vmatmul.bf16.gmra.mxu1 %v376_v50  ;;  %685 = vmatmul.bf16.gmra.mxu3 %v384_v51 }
  0xb1   : > { %493 = vmatmul.bf16.gmra.mxu0 %v377_v56  ;;  %533 = vmatmul.bf16.gmra.mxu2 %v385_v57 }
  0xb2   : > { %650 = vmatmul.bf16.gmra.mxu1 %v377_v56  ;;  %690 = vmatmul.bf16.gmra.mxu3 %v385_v57 }
  0xc1   : > { %498 = vmatmul.bf16.gmra.mxu0 %v378_v62  ;;  %538 = vmatmul.bf16.gmra.mxu2 %v386_v63 }
  0xc2   : > { %655 = vmatmul.bf16.gmra.mxu1 %v378_v62  ;;  %695 = vmatmul.bf16.gmra.mxu3 %v386_v63 }
  0xce   : > { %v464_v0 = vpop.f32.mrf.mxu0 }
  0xcf   : > { %v621_v1 = vpop.f32.mrf.mxu1  ;;  %v465_v7 = vadd.f32 %v1827_v2, %v464_v0 }
  0xd0   : > { %v622_v10 = vadd.f32 %v1832_v3, %v621_v1 }
  0xd4   : > { %v504_v4 = vpop.f32.mrf.mxu2 }
  0xd5   : > { %v661_v5 = vpop.f32.mrf.mxu3  ;;  %v505_v15 = vadd.f32 %v1827_v2, %v504_v4 }
  0xd6   : > { %v466_v6 = vpop.f32.mrf.mxu0  ;;  %v662_v18 = vadd.f32 %v1832_v3, %v661_v5 }
  0xd7   : > { %v467_v8 = vadd.f32 %v1827_v2, %v466_v6  ;;  %v623_v9 = vpop.f32.mrf.mxu1 }
  0xd8   : > { %v624_v11 = vadd.f32 %v1832_v3, %v623_v9 }
  0xd9   : > { %v1122_v12 = vpack.c.bf16 %v467_v8, %v465_v7 }
  0xda   : > { %v1202_v13 = vpack.c.bf16 %v624_v11, %v622_v10 }
  0xdb   : > { %1123 = vst [vmem:[%s1839_s28] sm:$0xff] %v1122_v12  }
  0xdc   : > { %1203 = vst [vmem:[%s1842_s10] sm:$0xff] %v1202_v13   ;;  %v506_v14 = vpop.f32.mrf.mxu2 }
  0xdd   : > { %v507_v16 = vadd.f32 %v1827_v2, %v506_v14  ;;  %v663_v17 = vpop.f32.mrf.mxu3 }
  0xde   : > { %v664_v19 = vadd.f32 %v1832_v3, %v663_v17  ;;  %v469_v20 = vpop.f32.mrf.mxu0 }
  0xdf   : > { %v1162_v21 = vpack.c.bf16 %v507_v16, %v505_v15  ;;  %v626_v22 = vpop.f32.mrf.mxu1  ;;  %v470_v27 = vadd.f32 %v1827_v2, %v469_v20 }
  0xe0   : > { %v1242_v23 = vpack.c.bf16 %v664_v19, %v662_v18  ;;  %v627_v30 = vadd.f32 %v1832_v3, %v626_v22 }
  0xe1   : > { %1286 = vst [vmem:[%s1839_s28 + $0x40] sm:$0xff] %v1162_v21  }
  0xe2   : > { %1301 = vst [vmem:[%s1842_s10 + $0x40] sm:$0xff] %v1242_v23  }
  0xe4   : > { %v509_v24 = vpop.f32.mrf.mxu2 }
  0xe5   : > { %v666_v25 = vpop.f32.mrf.mxu3  ;;  %v510_v35 = vadd.f32 %v1827_v2, %v509_v24 }
  0xe6   : > { %v471_v26 = vpop.f32.mrf.mxu0  ;;  %v667_v38 = vadd.f32 %v1832_v3, %v666_v25 }
  0xe7   : > { %v472_v28 = vadd.f32 %v1827_v2, %v471_v26  ;;  %v628_v29 = vpop.f32.mrf.mxu1 }
  0xe8   : > { %v629_v31 = vadd.f32 %v1832_v3, %v628_v29 }
  0xe9   : > { %v1127_v32 = vpack.c.bf16 %v472_v28, %v470_v27 }
  0xea   : > { %v1207_v33 = vpack.c.bf16 %v629_v31, %v627_v30 }
  0xeb   : > { %1279 = vst [vmem:[%s1839_s28 + $0x8] sm:$0xff] %v1127_v32  }
  0xec   : > { %1294 = vst [vmem:[%s1842_s10 + $0x8] sm:$0xff] %v1207_v33   ;;  %v511_v34 = vpop.f32.mrf.mxu2 }
  0xed   : > { %v512_v36 = vadd.f32 %v1827_v2, %v511_v34  ;;  %v668_v37 = vpop.f32.mrf.mxu3 }
  0xee   : > { %v669_v39 = vadd.f32 %v1832_v3, %v668_v37  ;;  %v474_v40 = vpop.f32.mrf.mxu0 }
  0xef   : > { %v1167_v41 = vpack.c.bf16 %v512_v36, %v510_v35  ;;  %v631_v42 = vpop.f32.mrf.mxu1  ;;  %v475_v47 = vadd.f32 %v1827_v2, %v474_v40 }
  0xf0   : > { %v1247_v43 = vpack.c.bf16 %v669_v39, %v667_v38  ;;  %v632_v50 = vadd.f32 %v1832_v3, %v631_v42 }
  0xf1   : > { %1287 = vst [vmem:[%s1839_s28 + $0x48] sm:$0xff] %v1167_v41  }
  0xf2   : > { %1302 = vst [vmem:[%s1842_s10 + $0x48] sm:$0xff] %v1247_v43  }
  0xf4   : > { %v514_v44 = vpop.f32.mrf.mxu2 }
  0xf5   : > { %v671_v45 = vpop.f32.mrf.mxu3  ;;  %v515_v55 = vadd.f32 %v1827_v2, %v514_v44 }
  0xf6   : > { %v476_v46 = vpop.f32.mrf.mxu0  ;;  %v672_v58 = vadd.f32 %v1832_v3, %v671_v45 }
  0xf7   : > { %v477_v48 = vadd.f32 %v1827_v2, %v476_v46  ;;  %v633_v49 = vpop.f32.mrf.mxu1 }
  0xf8   : > { %v634_v51 = vadd.f32 %v1832_v3, %v633_v49 }
  0xf9   : > { %v1132_v52 = vpack.c.bf16 %v477_v48, %v475_v47 }
  0xfa   : > { %v1212_v53 = vpack.c.bf16 %v634_v51, %v632_v50 }
  0xfb   : > { %1280 = vst [vmem:[%s1839_s28 + $0x10] sm:$0xff] %v1132_v52  }
  0xfc   : > { %1295 = vst [vmem:[%s1842_s10 + $0x10] sm:$0xff] %v1212_v53   ;;  %v516_v54 = vpop.f32.mrf.mxu2 }
  0xfd   : > { %v517_v56 = vadd.f32 %v1827_v2, %v516_v54  ;;  %v673_v57 = vpop.f32.mrf.mxu3 }
  0xfe   : > { %v674_v59 = vadd.f32 %v1832_v3, %v673_v57  ;;  %v479_v60 = vpop.f32.mrf.mxu0 }
  0xff   : > { %v1172_v61 = vpack.c.bf16 %v517_v56, %v515_v55  ;;  %v636_v62 = vpop.f32.mrf.mxu1  ;;  %v480_v5 = vadd.f32 %v1827_v2, %v479_v60 }
 0x100   : > { %v1252_v63 = vpack.c.bf16 %v674_v59, %v672_v58  ;;  %v637_v8 = vadd.f32 %v1832_v3, %v636_v62 }
 0x101   : > { %1288 = vst [vmem:[%s1839_s28 + $0x50] sm:$0xff] %v1172_v61  }
 0x102   : > { %1303 = vst [vmem:[%s1842_s10 + $0x50] sm:$0xff] %v1252_v63  }
 0x104   : > { %v519_v0 = vpop.f32.mrf.mxu2 }
 0x105   : > { %v676_v1 = vpop.f32.mrf.mxu3  ;;  %v520_v13 = vadd.f32 %v1827_v2, %v519_v0 }
 0x106   : > { %v481_v4 = vpop.f32.mrf.mxu0  ;;  %v677_v16 = vadd.f32 %v1832_v3, %v676_v1 }
 0x107   : > { %v482_v6 = vadd.f32 %v1827_v2, %v481_v4  ;;  %v638_v7 = vpop.f32.mrf.mxu1 }
 0x108   : > { %v639_v9 = vadd.f32 %v1832_v3, %v638_v7 }
 0x109   : > { %v1137_v10 = vpack.c.bf16 %v482_v6, %v480_v5 }
 0x10a   : > { %v1217_v11 = vpack.c.bf16 %v639_v9, %v637_v8 }
 0x10b   : > { %1281 = vst [vmem:[%s1839_s28 + $0x18] sm:$0xff] %v1137_v10  }
 0x10c   : > { %1296 = vst [vmem:[%s1842_s10 + $0x18] sm:$0xff] %v1217_v11   ;;  %v521_v12 = vpop.f32.mrf.mxu2 }
 0x10d   : > { %v522_v14 = vadd.f32 %v1827_v2, %v521_v12  ;;  %v678_v15 = vpop.f32.mrf.mxu3 }
 0x10e   : > { %v679_v17 = vadd.f32 %v1832_v3, %v678_v15  ;;  %v484_v18 = vpop.f32.mrf.mxu0 }
 0x10f   : > { %v1177_v19 = vpack.c.bf16 %v522_v14, %v520_v13  ;;  %v641_v20 = vpop.f32.mrf.mxu1  ;;  %v485_v25 = vadd.f32 %v1827_v2, %v484_v18 }
 0x110   : > { %v1257_v21 = vpack.c.bf16 %v679_v17, %v677_v16  ;;  %v642_v28 = vadd.f32 %v1832_v3, %v641_v20 }
 0x111   : > { %1289 = vst [vmem:[%s1839_s28 + $0x58] sm:$0xff] %v1177_v19  }
 0x112   : > { %1304 = vst [vmem:[%s1842_s10 + $0x58] sm:$0xff] %v1257_v21  }
 0x114   : > { %v524_v22 = vpop.f32.mrf.mxu2 }
 0x115   : > { %v681_v23 = vpop.f32.mrf.mxu3  ;;  %v525_v33 = vadd.f32 %v1827_v2, %v524_v22 }
 0x116   : > { %v486_v24 = vpop.f32.mrf.mxu0  ;;  %v682_v36 = vadd.f32 %v1832_v3, %v681_v23 }
 0x117   : > { %v487_v26 = vadd.f32 %v1827_v2, %v486_v24  ;;  %v643_v27 = vpop.f32.mrf.mxu1 }
 0x118   : > { %v644_v29 = vadd.f32 %v1832_v3, %v643_v27 }
 0x119   : > { %v1142_v30 = vpack.c.bf16 %v487_v26, %v485_v25 }
 0x11a   : > { %v1222_v31 = vpack.c.bf16 %v644_v29, %v642_v28 }
 0x11b   : > { %1282 = vst [vmem:[%s1839_s28 + $0x20] sm:$0xff] %v1142_v30  }
 0x11c   : > { %1297 = vst [vmem:[%s1842_s10 + $0x20] sm:$0xff] %v1222_v31   ;;  %v526_v32 = vpop.f32.mrf.mxu2 }
 0x11d   : > { %v527_v34 = vadd.f32 %v1827_v2, %v526_v32  ;;  %v683_v35 = vpop.f32.mrf.mxu3 }
 0x11e   : > { %v684_v37 = vadd.f32 %v1832_v3, %v683_v35  ;;  %v489_v38 = vpop.f32.mrf.mxu0 }
 0x11f   : > { %v1182_v39 = vpack.c.bf16 %v527_v34, %v525_v33  ;;  %v646_v40 = vpop.f32.mrf.mxu1  ;;  %v490_v45 = vadd.f32 %v1827_v2, %v489_v38 }
 0x120   : > { %v1262_v41 = vpack.c.bf16 %v684_v37, %v682_v36  ;;  %v647_v48 = vadd.f32 %v1832_v3, %v646_v40 }
 0x121   : > { %1290 = vst [vmem:[%s1839_s28 + $0x60] sm:$0xff] %v1182_v39  }
 0x122   : > { %1305 = vst [vmem:[%s1842_s10 + $0x60] sm:$0xff] %v1262_v41  }
 0x124   : > { %v529_v42 = vpop.f32.mrf.mxu2 }
 0x125   : > { %v686_v43 = vpop.f32.mrf.mxu3  ;;  %v530_v53 = vadd.f32 %v1827_v2, %v529_v42 }
 0x126   : > { %v491_v44 = vpop.f32.mrf.mxu0  ;;  %v687_v56 = vadd.f32 %v1832_v3, %v686_v43 }
 0x127   : > { %v492_v46 = vadd.f32 %v1827_v2, %v491_v44  ;;  %v648_v47 = vpop.f32.mrf.mxu1 }
 0x128   : > { %v649_v49 = vadd.f32 %v1832_v3, %v648_v47 }
 0x129   : > { %v1147_v50 = vpack.c.bf16 %v492_v46, %v490_v45 }
 0x12a   : > { %v1227_v51 = vpack.c.bf16 %v649_v49, %v647_v48 }
 0x12b   : > { %1283 = vst [vmem:[%s1839_s28 + $0x28] sm:$0xff] %v1147_v50  }
 0x12c   : > { %1298 = vst [vmem:[%s1842_s10 + $0x28] sm:$0xff] %v1227_v51   ;;  %v531_v52 = vpop.f32.mrf.mxu2 }
 0x12d   : > { %v532_v54 = vadd.f32 %v1827_v2, %v531_v52  ;;  %v688_v55 = vpop.f32.mrf.mxu3 }
 0x12e   : > { %v689_v57 = vadd.f32 %v1832_v3, %v688_v55  ;;  %v494_v58 = vpop.f32.mrf.mxu0 }
 0x12f   : > { %v1187_v59 = vpack.c.bf16 %v532_v54, %v530_v53  ;;  %v651_v60 = vpop.f32.mrf.mxu1  ;;  %v495_v1 = vadd.f32 %v1827_v2, %v494_v58 }
 0x130   : > { %v1267_v61 = vpack.c.bf16 %v689_v57, %v687_v56  ;;  %v652_v6 = vadd.f32 %v1832_v3, %v651_v60 }
 0x131   : > { %1291 = vst [vmem:[%s1839_s28 + $0x68] sm:$0xff] %v1187_v59  }
 0x132   : > { %1306 = vst [vmem:[%s1842_s10 + $0x68] sm:$0xff] %v1267_v61  }
 0x134   : > { %v534_v62 = vpop.f32.mrf.mxu2 }
 0x135   : > { %v691_v63 = vpop.f32.mrf.mxu3  ;;  %v535_v11 = vadd.f32 %v1827_v2, %v534_v62 }
 0x136   : > { %v496_v0 = vpop.f32.mrf.mxu0  ;;  %v692_v14 = vadd.f32 %v1832_v3, %v691_v63 }
 0x137   : > { %v497_v4 = vadd.f32 %v1827_v2, %v496_v0  ;;  %v653_v5 = vpop.f32.mrf.mxu1 }
 0x138   : > { %v654_v7 = vadd.f32 %v1832_v3, %v653_v5 }
 0x139   : > { %v1152_v8 = vpack.c.bf16 %v497_v4, %v495_v1 }
 0x13a   : > { %v1232_v9 = vpack.c.bf16 %v654_v7, %v652_v6 }
 0x13b   : > { %1284 = vst [vmem:[%s1839_s28 + $0x30] sm:$0xff] %v1152_v8  }
 0x13c   : > { %1299 = vst [vmem:[%s1842_s10 + $0x30] sm:$0xff] %v1232_v9   ;;  %v536_v10 = vpop.f32.mrf.mxu2 }
 0x13d   : > { %v537_v12 = vadd.f32 %v1827_v2, %v536_v10  ;;  %v693_v13 = vpop.f32.mrf.mxu3 }
 0x13e   : > { %v694_v15 = vadd.f32 %v1832_v3, %v693_v13  ;;  %v499_v16 = vpop.f32.mrf.mxu0 }
 0x13f   : > { %v1192_v17 = vpack.c.bf16 %v537_v12, %v535_v11  ;;  %v656_v18 = vpop.f32.mrf.mxu1  ;;  %v500_v23 = vadd.f32 %v1827_v2, %v499_v16 }
 0x140   : > { %v1272_v19 = vpack.c.bf16 %v694_v15, %v692_v14  ;;  %v657_v26 = vadd.f32 %v1832_v3, %v656_v18 }
 0x141   : > { %1292 = vst [vmem:[%s1839_s28 + $0x70] sm:$0xff] %v1192_v17  }
 0x142   : > { %1307 = vst [vmem:[%s1842_s10 + $0x70] sm:$0xff] %v1272_v19  }
 0x144   : > { %v539_v20 = vpop.f32.mrf.mxu2 }
 0x145   : > { %v696_v21 = vpop.f32.mrf.mxu3  ;;  %v540_v31 = vadd.f32 %v1827_v2, %v539_v20 }
 0x146   : > { %v501_v22 = vpop.f32.mrf.mxu0  ;;  %v697_v34 = vadd.f32 %v1832_v3, %v696_v21 }
 0x147   : > { %v502_v24 = vadd.f32 %v1827_v2, %v501_v22  ;;  %v658_v25 = vpop.f32.mrf.mxu1 }
 0x148   : > { %v659_v27 = vadd.f32 %v1832_v3, %v658_v25 }
 0x149   : > { %v1157_v28 = vpack.c.bf16 %v502_v24, %v500_v23 }
 0x14a   : > { %v1237_v29 = vpack.c.bf16 %v659_v27, %v657_v26 }
 0x14b   : > { %1285 = vst [vmem:[%s1839_s28 + $0x38] sm:$0xff] %v1157_v28  }
 0x14c   : > { %1300 = vst [vmem:[%s1842_s10 + $0x38] sm:$0xff] %v1237_v29   ;;  %v541_v30 = vpop.f32.mrf.mxu2 }
 0x14d   : > { %v542_v32 = vadd.f32 %v1827_v2, %v541_v30  ;;  %v698_v33 = vpop.f32.mrf.mxu3 }
 0x14e   : > { %v699_v35 = vadd.f32 %v1832_v3, %v698_v33 }
 0x14f   : > { %v1197_v36 = vpack.c.bf16 %v542_v32, %v540_v31 }
 0x150   : > { %v1277_v37 = vpack.c.bf16 %v699_v35, %v697_v34 }
 0x151   : > { %1293 = vst [vmem:[%s1839_s28 + $0x78] sm:$0xff] %v1197_v36  }
 0x152   : > { %1308 = vst [vmem:[%s1842_s10 + $0x78] sm:$0xff] %v1277_v37  }
 0x153   : > { %1538 = shalt.err (!%p1535_p0)
}
 0x154   : > { %s1637_s28 = smov 64   ;;  %s1638_s10 = smov 4  }
 0x155   : > { %1335 = dma.vmem_to_hbm [thread:$0]  (%p1757_p7), %s1939_s20, 2048, %s852_s13, %s830_s3, %s1637_s28, %s1637_s28, %s1638_s10  }
 0x156   : > { %s835_s19 = scalar_lea.sflag [#allocation10], %s1778_s9  ;;  %s1553_s27 = sshra.s32 %s1947_s15, 4  ;;  %s1554_s27 = int_to_ptr.hbm [resolvable:$true] %s1553_s27 }
 0x157   : > { %s1555_s24 = scalar_lea.hbm %s1554_s27, 128  ;;  %s1559_s7 = scalar_lea.hbm %s2005_s6, 256 }
 0x158   : > { %p1556_p3 = scmp.ne.s32.totalorder %s1554_s27, %s1555_s24  ;;  %p1560_p2 = scmp.lt.s32.totalorder %s1554_s27, %s2005_s6 }
 0x159   : > { %p1561_p1 = scmp.lt.s32.totalorder %s1559_s7, %s1555_s24 }
 0x15a   : > { %p1557_p5 = pnand %p1556_p3, %p1757_p7 }
 0x15b   : > { %p1562_p4 = por %p1561_p1, %p1560_p2 }
 0x15c   : > { %p1558_p9 = pneg %p1557_p5 }
 0x15e   : > { %p1563_p8 = pnand %p1562_p4, %p1558_p9 }
 0x160   : > { %1566 = shalt.err (!%p1563_p8)
}
 0x161   : > { %1336 = dma.vmem_to_hbm [thread:$0]  (%p1757_p7), %s1945_s1, 2048, %s1947_s15, %s835_s19, %s1637_s28, %s1637_s28, %s1638_s10  }
 0x162 PF: > { %s885_s20 = sand.u32 1, %s1609_s21   ;;  %p1351_p10 = pnand %p1018_p11, %p1723_p6 }
 0x163   : > { %s886_s13 = scalar_lea.sflag [#allocation4], %s885_s20 }
 0x164   : > { %p1352_p12 = pneg %p1351_p10 }
 0x166   : > { %1600 = dma.done.wait (%p1352_p12), %s886_s13, 2048  }
 0x167   : > { %1602 = vsyncadd (%p1352_p12), %s886_s13, 4294965248  ;;  %s896_s3 = scalar_lea.sflag [#allocation10], %s885_s20 }
 0x168   : > { %1604 = dma.done.wait (%p1352_p12), %s896_s3, 2048  }
 0x169   : > { %1606 = vsyncadd (%p1352_p12), %s896_s3, 4294965248  ;;  %s27_s26 = sadd.s32 1, %s1629_s26   ;;  %s2022_s11 = sld [smem:[#allocation16_spill]] }
 0x16a   : > { %p24_p13 = scmp.ge.s32.totalorder %s27_s26, 4   ;;  %s2023_s21 = smov %s1613_s22 }
 0x16b   : > { %s2024_s22 = smov %s1617_s23  ;;  %s2025_s23 = smov %s1766_s17 }
 0x16c   : > { %s2026_s24 = smov %s1625_s25  ;;  %26 = sbr.rel (!%p24_p13) target bundleno = 12 (0xc), region = 110 }
 0x16f   : > { %s2027_s25 = smov %s2022_s11 }
 0x171   :  { %902 = vsyncpa [#allocation3], 1 }
 0x172   :  { %904 = vsyncpa [#allocation3 + $0x1], 1 }
 0x173   :  { %905 = vsyncpa [#allocation6], 1 }
 0x174   :  { %906 = vsyncpa [#allocation4], 1 }
 0x175   :  { %908 = vsyncpa [#allocation4 + $0x1], 1 }
 0x176   :  { %909 = vsyncpa [#allocation10], 1 }
 0x177   :  { %911 = vsyncpa [#allocation10 + $0x1], 1 }

</bundles_post_ra>
